<compile_context>
chip_gen: v7x
topology: tpu7x:2x2x1
jax: 0.10.0
libtpu: 0.0.40
codegen_flags: <defaults>
</compile_context>

<pallas_src>
import math
import jax
import jax.numpy as jnp
from jax.experimental import pallas as pl
from jax.experimental.pallas import tpu as pltpu


def _round_up(n: int, m: int) -> int:
    return ((n + m - 1) // m) * m


def _cap_tm_for_vmem(tm, d_in, d_model, in_bytes, out_bytes, sublane,
                     budget=12 << 20):
    """Cap the row tile so 2x-buffered x/out tiles + resident weights+bias fit the
    most conservative default scoped-VMEM budget (v5e: 16 MiB; leave headroom)."""
    per_row = 2 * (d_in * in_bytes + d_model * out_bytes)      # double-buffered tiles
    resident = 2 * (d_in * d_model * in_bytes + d_model * 4)   # weights + f32 bias
    avail = budget - resident
    if avail <= per_row * sublane:
        return min(tm, sublane)
    cap = (avail // per_row) // sublane * sublane
    return min(tm, int(cap))


def token_embedding_kernel(x_ref, w_ref, b_ref, o_ref):
    # (tm, 3*c_in) @ (3*c_in, d_model) on the MXU with f32 accumulation;
    # f32 bias add fused in the epilogue (VPU work hides under the DMA stream),
    # single cast at the store.
    acc = jnp.dot(x_ref[...], w_ref[...], preferred_element_type=jnp.float32)
    o_ref[...] = (acc + b_ref[...]).astype(o_ref.dtype)


def token_embedding(x, weight, bias, *, tm=1024,
                    compute_dtype=jnp.bfloat16, out_dtype=None):
    """Pallas TokenEmbedding forward.

    x:      (B, T, c_in)
    weight: (d_model, c_in, 3) PyTorch Conv1d layout, or pre-folded (3*c_in, d_model)
    bias:   (d_model,)
    returns (B, T, d_model) in `out_dtype` (default: x.dtype)
    """
    B, T, c_in = x.shape
    if weight.ndim == 3:
        d_model = weight.shape[0]
        assert weight.shape == (d_model, c_in, 3)
        # tap ordering: W[:,:,0] <-> t-1, W[:,:,1] <-> t, W[:,:,2] <-> t+1
        w_cat = jnp.concatenate([weight[:, :, 0].T,
                                 weight[:, :, 1].T,
                                 weight[:, :, 2].T], axis=0)     # (3*c_in, d_model)
    else:  # already folded once at init time (avoids per-call transpose/concat)
        assert weight.shape[0] == 3 * c_in
        d_model = weight.shape[1]
        w_cat = weight

    out_dtype = x.dtype if out_dtype is None else out_dtype
    compute_dtype = x.dtype if compute_dtype is None else compute_dtype

    # --- circular conv -> single GEMM (wrapper-side rolls/concat fuse in XLA) -----
    xc = x.astype(compute_dtype)
    x_cat = jnp.concatenate([jnp.roll(xc, 1, axis=1),   # x[b, (t-1) % T, :]
                             xc,
                             jnp.roll(xc, -1, axis=1)],  # x[b, (t+1) % T, :]
                            axis=-1)                     # (B, T, 3*c_in)
    d_in = 3 * c_in
    M = B * T
    x2d = x_cat.reshape(M, d_in)
    w_cat = w_cat.astype(compute_dtype)
    b_row = bias.astype(jnp.float32).reshape(1, d_model)  # f32 epilogue bias

    in_bytes = jnp.dtype(compute_dtype).itemsize
    out_bytes = jnp.dtype(out_dtype).itemsize
    SUB = 16  # sublane granularity safe for both f32 and packed bf16 tiles

    # --- row tiling: big tiles, VMEM-budgeted, >=2 blocks for v7x megacore --------
    tm_eff = min(tm, _round_up(M, SUB))
    tm_eff = _cap_tm_for_vmem(tm_eff, d_in, d_model, in_bytes, out_bytes, SUB)
    if _round_up(M, tm_eff) // tm_eff < 2 and M % (2 * SUB) == 0:
        tm_eff = max(SUB, M // 2)          # split rows across the 2 TCs on v7x
    m_pad = _round_up(M, tm_eff)
    if m_pad != M:
        x2d = jnp.pad(x2d, ((0, m_pad - M), (0, 0)))

    grid = (m_pad // tm_eff,)
    cost = pl.CostEstimate(
        flops=2 * M * d_in * d_model,
        transcendentals=0,
        bytes_accessed=(M * d_in * in_bytes            # x_cat read
                        + d_in * d_model * in_bytes    # weights (resident)
                        + d_model * 4                  # bias
                        + M * d_model * out_bytes))    # output write (dominant)

    out2d = pl.pallas_call(
        token_embedding_kernel,
        out_shape=jax.ShapeDtypeStruct((m_pad, d_model), out_dtype),
        grid_spec=pltpu.PrefetchScalarGridSpec(
            num_scalar_prefetch=0,
            grid=grid,
            in_specs=[
                # full-extent last dims: exempt from the 128 rule, no HBM zero-pad
                pl.BlockSpec((tm_eff, d_in), lambda i: (i, 0)),
                pl.BlockSpec((d_in, d_model), lambda i: (0, 0)),   # resident weights
                pl.BlockSpec((1, d_model), lambda i: (0, 0)),      # resident bias
            ],
            out_specs=pl.BlockSpec((tm_eff, d_model), lambda i: (i, 0)),
        ),
        compiler_params=pltpu.CompilerParams(
            # independent row blocks -> shardable across the 2 TCs on v7x
            dimension_semantics=("parallel",)),
        cost_estimate=cost,
    )(x2d, w_cat, b_row)

    if m_pad != M:
        out2d = out2d[:M]                  # cheap leading-dim slice (rare in practice)
    return out2d.reshape(B, T, d_model)


def init_token_embedding_params(key, c_in, d_model, dtype=jnp.float32):
    """Mimic PyTorch init: kaiming_normal_(fan_in, leaky_relu) on weight,
    default Conv1d uniform bias."""
    k_w, k_b = jax.random.split(key)
    fan_in = c_in * 3
    gain = math.sqrt(2.0 / (1.0 + 0.01 ** 2))
    std = gain / math.sqrt(fan_in)
    weight = (std * jax.random.normal(k_w, (d_model, c_in, 3))).astype(dtype)
    bound = 1.0 / math.sqrt(fan_in)
    bias = jax.random.uniform(k_b, (d_model,), minval=-bound, maxval=bound,
                              dtype=dtype)
    return weight, bias


def _reference(x, weight, bias, seq):
    """Pure-JAX reference: explicit circular pad + conv as a sum over the 3 taps."""
    xt = jnp.transpose(x, (0, 2, 1))                                  # (B, c_in, T)
    xp = jnp.concatenate([xt[:, :, -1:], xt, xt[:, :, :1]], axis=-1)  # circular pad=1
    ref = bias[None, :, None] + sum(
        jnp.einsum("oc,bct->bot", weight[:, :, k], xp[:, :, k:k + seq])
        for k in range(3))
    return jnp.transpose(ref, (0, 2, 1))                              # (B, T, d_model)


if __name__ == "__main__":
    # Small shapes consistent with the module: batch=2, seq=8, c_in=4, d_model=32
    batch, seq, c_in, d_model = 2, 8, 4, 32

    key = jax.random.PRNGKey(0)
    kx, kp = jax.random.split(key)
    x = jax.random.normal(kx, (batch, seq, c_in), dtype=jnp.float32)
    weight, bias = init_token_embedding_params(kp, c_in, d_model)

    # --- production path: bf16 inputs, f32 accumulate + f32 bias, f32 out ---------
    out = jax.block_until_ready(token_embedding(x, weight, bias))
    assert out.shape == (batch, seq, d_model)
    xb = x.astype(jnp.bfloat16).astype(jnp.float32)
    wb = weight.astype(jnp.bfloat16).astype(jnp.float32)
    ref_bf16_in = _reference(xb, wb, bias, seq)
    err = float(jnp.max(jnp.abs(out - ref_bf16_in)))
    assert jnp.allclose(out, ref_bf16_in, atol=1e-3, rtol=1e-3), err

    # --- exactness check: pure f32 path against the f32 reference -----------------
    out32 = jax.block_until_ready(
        token_embedding(x, weight, bias, compute_dtype=jnp.float32))
    ref32 = _reference(x, weight, bias, seq)
    err32 = float(jnp.max(jnp.abs(out32 - ref32)))
    assert jnp.allclose(out32, ref32, atol=1e-4, rtol=1e-4), err32

    print("KERNEL_OK")
</pallas_src>

<mosaic_0001>
module attributes {stable_mosaic.version = 11 : i64} {
  func.func @token_embedding_kernel(%arg0: i32, %arg1: memref<16x12xbf16, #tpu.memory_space<vmem>>, %arg2: memref<12x32xbf16, #tpu.memory_space<vmem>>, %arg3: memref<1x32xf32, #tpu.memory_space<vmem>>, %arg4: memref<16x32xf32, #tpu.memory_space<vmem>>) attributes {dimension_semantics = [#tpu.dimension_semantics<parallel>], iteration_bounds = array<i64: 1>, scalar_prefetch = 0 : i64, scratch_operands = 0 : i64, tpu.core_type = #tpu.core_type<tc>, window_params = [{transform_indices = @transform_0, window_bounds = array<i64: 16, 12>}, {pipeline_mode = #tpu.pipeline_mode<synchronous>, transform_indices = @transform_1, window_bounds = array<i64: 12, 32>}, {pipeline_mode = #tpu.pipeline_mode<synchronous>, transform_indices = @transform_2, window_bounds = array<i64: 1, 32>}, {transform_indices = @transform_3, window_bounds = array<i64: 16, 32>}]} {
    %c0 = arith.constant 0 : index
    %c0_0 = arith.constant 0 : index
    %0 = vector.load %arg1[%c0, %c0_0] : memref<16x12xbf16, #tpu.memory_space<vmem>>, vector<16x12xbf16>
    %c0_1 = arith.constant 0 : index
    %c0_2 = arith.constant 0 : index
    %1 = vector.load %arg2[%c0_1, %c0_2] : memref<12x32xbf16, #tpu.memory_space<vmem>>, vector<12x32xbf16>
    %cst = arith.constant dense<0.000000e+00> : vector<16x32xf32>
    %2 = tpu.matmul %0, %1, %cst {dimension_numbers = #tpu.dot_dimension_numbers<[1], [0], [0], [1], [0, 0, 1, 1], [], []>} : vector<16x12xbf16>, vector<12x32xbf16>, vector<16x32xf32> -> vector<16x32xf32>
    %c0_3 = arith.constant 0 : index
    %c0_4 = arith.constant 0 : index
    %3 = vector.load %arg3[%c0_3, %c0_4] : memref<1x32xf32, #tpu.memory_space<vmem>>, vector<1x32xf32>
    %4 = vector.broadcast %3 : vector<1x32xf32> to vector<16x32xf32>
    %5 = arith.addf %2, %4 : vector<16x32xf32>
    %c0_5 = arith.constant 0 : index
    %c0_6 = arith.constant 0 : index
    %6 = vector.load %arg4[%c0_5, %c0_6] : memref<16x32xf32, #tpu.memory_space<vmem>>, vector<16x32xf32>
    tpu.vector_store %arg4[%c0_5, %c0_6], %5 {strides = array<i32>} : memref<16x32xf32, #tpu.memory_space<vmem>>, vector<16x32xf32>,
    return
  }
  func.func @transform_0(%arg0: i32) -> (i32, i32) {
    %c0_i32 = arith.constant 0 : i32
    %c0_i32_0 = arith.constant 0 : i32
    return %arg0, %c0_i32 : i32, i32
  }
  func.func @transform_1(%arg0: i32) -> (i32, i32) {
    %c0_i32 = arith.constant 0 : i32
    %c0_i32_0 = arith.constant 0 : i32
    %c0_i32_1 = arith.constant 0 : i32
    return %c0_i32, %c0_i32_0 : i32, i32
  }
  func.func @transform_2(%arg0: i32) -> (i32, i32) {
    %c0_i32 = arith.constant 0 : i32
    %c0_i32_0 = arith.constant 0 : i32
    %c0_i32_1 = arith.constant 0 : i32
    return %c0_i32, %c0_i32_0 : i32, i32
  }
  func.func @transform_3(%arg0: i32) -> (i32, i32) {
    %c0_i32 = arith.constant 0 : i32
    %c0_i32_0 = arith.constant 0 : i32
    return %arg0, %c0_i32 : i32, i32
  }
}

</mosaic_0001>

<bundles_post_ra>
// kernel: tpu_custom_call.1
= control target key start
LH: loop header
LB: loop body
LE: loop exit
PB: predicated region body
PF: predicated region fallthrough
CT: control target
= control target key end

     0   :  { %8 = vsyncpa [#allocation3], 0  ;;  %s298_s0 = inlined_call_operand.hbm [shape: bf16[16,12], index: 0, kind: input, shape index: {}]   ;;  %s299_s1 = inlined_call_operand.hbm [shape: bf16[12,32], index: 1, kind: input, shape index: {}]   ;;  %s300_s2 = inlined_call_operand.vmem [shape: f32[1,32], index: 2, kind: input, shape index: {}]   ;;  %s301_s3 = inlined_call_operand.hbm [shape: f32[16,32], index: 3, kind: output, shape index: {}]  }
   0x1   :  { %9 = vsyncpa [#allocation6], 0 }
   0x2   :  { %10 = vsyncpa [#allocation4], 0  ;;  %s230_s12 = smov [#allocation2]   ;;  %s158_s16 = scalar_lea.hbm %s298_s0, 128 }
   0x3   :  { %s16_s13 = sshll.u32 %s230_s12, 4  ;;  %p159_p0 = scmp.ne.s32.totalorder %s298_s0, %s158_s16  ;;  %s17_s13 = int_to_ptr.vmem [resolvable:$true] %s16_s13 }
   0x4   :  { %p162_p1 = scmp.lt.u32.totalorder %s158_s16, %s298_s0 }
   0x6   :  { %p164_p2 = pnand %p162_p1, %p159_p0 }
   0x8   :  { %167 = shalt.err (!%p164_p2)
}
   0x9   :  { %s168_s21 = scalar_lea.vmem %s17_s13, 128  ;;  %p173_p4 = scmp.lt.s32.totalorder %s17_s13, %s17_s13 }
   0xa   :  { %p169_p3 = scmp.ne.s32.totalorder %s17_s13, %s168_s21  ;;  %p174_p5 = scmp.lt.s32.totalorder %s168_s21, %s168_s21 }
   0xc   :  { %p175_p6 = por %p174_p5, %p173_p4 }
   0xe   :  { %p176_p7 = pnand %p175_p6, %p169_p3 }
  0x10   :  { %179 = shalt.err (!%p176_p7)
}
  0x11   :  { %s231_s22 = smov 64   ;;  %s232_s23 = smov 4  }
  0x12   :  { %22 = dma.hbm_to_vmem [thread:$0]  %s298_s0, 128, %s17_s13, [#allocation3], %s231_s22, %s231_s22, %s232_s23  }
  0x13   :  { %s233_s26 = smov [#allocation5]   ;;  %s180_s30 = scalar_lea.hbm %s299_s1, 128 }
  0x14   :  { %s28_s27 = sshll.u32 %s233_s26, 4  ;;  %p181_p8 = scmp.ne.s32.totalorder %s299_s1, %s180_s30  ;;  %s29_s27 = int_to_ptr.vmem [resolvable:$true] %s28_s27 }
  0x15   :  { %p184_p9 = scmp.lt.u32.totalorder %s180_s30, %s299_s1 }
  0x17   :  { %p186_p10 = pnand %p184_p9, %p181_p8 }
  0x19   :  { %189 = shalt.err (!%p186_p10)
}
  0x1a   :  { %s190_s8 = scalar_lea.vmem %s29_s27, 128  ;;  %p195_p12 = scmp.lt.s32.totalorder %s29_s27, %s29_s27 }
  0x1b   :  { %p191_p11 = scmp.ne.s32.totalorder %s29_s27, %s190_s8  ;;  %p196_p13 = scmp.lt.s32.totalorder %s190_s8, %s190_s8 }
  0x1d   :  { %p197_p0 = por %p196_p13, %p195_p12 }
  0x1f   :  { %p198_p1 = pnand %p197_p0, %p191_p11 }
  0x21   :  { %201 = shalt.err (!%p198_p1)
}
  0x22   :  { %34 = dma.hbm_to_vmem [thread:$0]  %s299_s1, 128, %s29_s27, [#allocation6], %s231_s22, %s231_s22, %s232_s23  }
  0x23   :  { %224 = dma.done.wait [#allocation3], 128  }
  0x24   :  { %225 = vsyncadd [#allocation3], 4294967168 }
  0x25   :  { %226 = dma.done.wait [#allocation6], 128  }
  0x26   :  { %227 = vsyncadd [#allocation6], 4294967168  ;;  %v234_v0 = vmov 0.0   ;;  %vm235_vm0 = vmmov 0   ;;  %vm69_vm1 = vcmask 1045504   ;;  %v157_v3 = vld [vmem:[#allocation2] sm:$0xff]  }
  0x27   :  { %141 = vmatprep.subr.bf16.mxu0 %v234_v0  ;;  %143 = vmatprep.mubr.msk.bf16.mxu0 %vm235_vm0, %v234_v0  ;;  %v156_v1 = vld [vmem:[#allocation5] sm:$0x3f]   ;;  %vm65_vm2 = vcmask 97280   ;;  %v135_v4 = vld [vmem:[%s300_s2] ss:$0 sm:$0xff]  ;;  %s236_s1 = smov [#allocation7]  }
  0x28   :  { %v71_v2 = vsel %vm69_vm1, %v156_v1, 0  ;;  %s122_s12 = sshll.u32 %s236_s1, 4  ;;  %vm114_vm3 = vcmask 261120   ;;  %s123_s12 = int_to_ptr.vmem [resolvable:$true] %s122_s12 }
  0x29   :  { %142 = vmatpush3.bf16.msra.mxu0 %v71_v2  ;;  %s202_s13 = scalar_lea.vmem %s123_s12, 256  ;;  %p207_p3 = scmp.lt.s32.totalorder %s123_s12, %s123_s12 }
  0x2a   :  { %p203_p2 = scmp.ne.s32.totalorder %s123_s12, %s202_s13  ;;  %p208_p4 = scmp.lt.s32.totalorder %s202_s13, %s202_s13 }
  0x2c   :  { %144 = vmatmul.mubr.msk.bf16.vlgmr.msra.gmra.mrb[0].mxu0 %vm65_vm2, %v157_v3  ;;  %p209_p5 = por %p208_p4, %p207_p3 }
  0x2e   :  { %p210_p6 = pnand %p209_p5, %p203_p2 }
  0xff   :  { %v107_v5 = vpop.f32.mrb[0].mxu0 }
 0x100   :  { %v108_v6 = vadd.f32 %v135_v4, %v107_v5  ;;  %v145_v7 = vpop.f32.mrb[1].mxu0 }
 0x101   :  { %v110_v8 = vpop.f32.mrb[2].mxu0 }
 0x102   :  { %115 = vst.msk [vmem:[#allocation7] sm:$0xff] %vm114_vm3, %v108_v6  ;;  %v111_v9 = vadd.f32 %v135_v4, %v110_v8  ;;  %v146_v10 = vpop.f32.mrb[3].mxu0 }
 0x104   :  { %116 = vst.msk [vmem:[#allocation7 + $0x8] sm:$0xff] %vm114_vm3, %v111_v9 }
 0x105   :  { %213 = shalt.err (!%p210_p6)
}
 0x106   :  { %s214_s15 = scalar_lea.hbm %s301_s3, 256 }
 0x107   :  { %p215_p7 = scmp.ne.s32.totalorder %s301_s3, %s214_s15  ;;  %p218_p8 = scmp.lt.u32.totalorder %s214_s15, %s301_s3 }
 0x109   :  { %p220_p9 = pnand %p218_p8, %p215_p7 }
 0x10b   :  { %223 = shalt.err (!%p220_p9)
}
 0x10c   :  { %s237_s20 = smov 128   ;;  %s238_s21 = smov 8  }
 0x10d   :  { %128 = dma.vmem_to_hbm [thread:$0]  %s123_s12, 256, %s301_s3, [#allocation4], %s237_s20, %s237_s20, %s238_s21  }
 0x10e   :  { %228 = dma.done.wait [#allocation4], 256  }
 0x10f   :  { %229 = vsyncadd [#allocation4], 4294967040 }
 0x110   :  { %132 = vsyncpa [#allocation3], 1 }
 0x111   :  { %133 = vsyncpa [#allocation6], 1 }
 0x112   :  { %134 = vsyncpa [#allocation4], 1 }

</bundles_post_ra>
